<compile_context>
chip_gen: v5e
topology: v5e:2x2
jax: 0.10.0
libtpu: 0.0.40
codegen_flags: <defaults>
</compile_context>

<pallas_src>
import math
import numpy as np
import jax
import jax.numpy as jnp
from jax import lax
from jax.experimental import pallas as pl
from jax.experimental.pallas import tpu as pltpu


# ----------------------------- configuration --------------------------------
CFG = {
    "n_img": 100,
    "tracking": {
        "poseNet_freq": 4,                 # -> input_t_dim = 2*4 + 1 = 9
        "layers_feat": [9, 32, 32, 32, 3], # 4 Linear layers
        "skip": [2],                       # layer 2 gets points_enc concatenated
    },
}
L_FREQ = CFG["tracking"]["poseNet_freq"]
INPUT_T_DIM = L_FREQ * 2 + 1
MIN_INDEX = 0.0
MAX_INDEX = float(CFG["n_img"])
N_PAD = 32                                 # lane width of the packed weight slab
PE_PAD = 16                                # pe padded to 16 lanes (sublane aligned)
MAX_TILE = 1024                            # max batch rows per grid step


def _round_up(n, m):
    return ((n + m - 1) // m) * m


# --------------------------- parameter init ----------------------------------
def init_params(key):
    """Deterministic re-implementation of tensorflow_init_weights.

    Weights are stored (in_features, out_features) so the kernel computes
    x @ W + b directly (torch stores (out, in))."""
    layers = CFG["tracking"]["layers_feat"]
    pairs = list(zip(layers[:-1], layers[1:]))
    params = []
    for li, (k_in, k_out) in enumerate(pairs):
        if li == 0:
            k_in = INPUT_T_DIM
        if li in CFG["tracking"]["skip"]:
            k_in += INPUT_T_DIM
        if li == len(pairs) - 1:
            k_out = 3
        key, wk = jax.random.split(key)
        if li == len(pairs) - 1:
            # torch.nn.init.uniform_(weight, b=1e-6)  ("small")
            w = jax.random.uniform(wk, (k_in, k_out), jnp.float32, 0.0, 1e-6)
        else:
            # xavier_uniform_ with gain=1  ("all")
            bound = math.sqrt(6.0 / (k_in + k_out))
            w = jax.random.uniform(wk, (k_in, k_out), jnp.float32, -bound, bound)
        b = jnp.zeros((k_out,), jnp.float32)
        params.append((w, b))
    return params


# ------------------------- host-side weight packing ---------------------------
def pack_params(params):
    """Pack all (W, b) into one (K_total, 32) f32 slab (done ONCE at init).

    Per-layer block (row starts 8-aligned so every in-kernel slice begins on a
    sublane boundary):
        rows [0, feat_rows)                weight rows consuming the 32-wide feat
        rows [feat_rows, feat_rows+pe_rows) weight rows consuming the 16-wide pe
                                            (layer 0 and skip layers only)
        next row                            bias (broadcast-added)
        remaining rows up to 8-pad          zeros
    Output columns are zero-padded to 32 lanes (tanh(0)=0 keeps padding inert).
    """
    skip = set(CFG["tracking"]["skip"])
    blocks, meta, cur = [], [], 0
    n_layers = len(params)
    for li, (w, b) in enumerate(params):
        w = np.asarray(w, np.float32)
        b = np.asarray(b, np.float32)
        k_in, k_out = w.shape
        if li == 0:                                   # pe-only input
            feat_rows, pe_rows = 0, PE_PAD
            wf = np.zeros((0, N_PAD), np.float32)
            wp = np.zeros((PE_PAD, N_PAD), np.float32)
            wp[:k_in, :k_out] = w
        elif li in skip:                              # [feat | pe] input -> split
            feat_rows, pe_rows = k_in - INPUT_T_DIM, PE_PAD
            wf = np.zeros((feat_rows, N_PAD), np.float32)
            wf[:, :k_out] = w[:feat_rows]
            wp = np.zeros((PE_PAD, N_PAD), np.float32)
            wp[:INPUT_T_DIM, :k_out] = w[feat_rows:]
        else:                                         # feat-only input
            feat_rows, pe_rows = k_in, 0
            wf = np.zeros((feat_rows, N_PAD), np.float32)
            wf[:, :k_out] = w
            wp = np.zeros((0, N_PAD), np.float32)
        bias = np.zeros((1, N_PAD), np.float32)
        bias[0, :k_out] = b
        block = np.concatenate([wf, wp, bias], axis=0)
        rows_pad = _round_up(block.shape[0], 8)
        block = np.pad(block, ((0, rows_pad - block.shape[0]), (0, 0)))
        meta.append(dict(row_start=cur, feat_rows=feat_rows, pe_rows=pe_rows,
                         bias_row=cur + feat_rows + pe_rows,
                         last=(li == n_layers - 1)))
        blocks.append(block)
        cur += rows_pad
    slab = np.concatenate(blocks, axis=0)
    return slab, meta


# ------------------------------ Pallas kernel --------------------------------
def make_transnet_kernel(meta):
    def kernel(idx_ref, w_ref, out_ref):
        bb = idx_ref.shape[0]

        # normalize frame index to [-1, 1]
        x = 2.0 * (idx_ref[...] - MIN_INDEX) / (MAX_INDEX - MIN_INDEX) - 1.0  # (BB,1)

        # positional encoding pe = [x | sin(x*pi*2^l) | cos(x*pi*2^l)] built
        # lane-parallel on a (BB, 16) tile: iota + scalar selects only, no
        # concatenates / XLU lane shifts.  (Scalar constants only -> no captured
        # array constants.)
        lane = lax.broadcasted_iota(jnp.int32, (bb, PE_PAD), 1)
        kexp = jnp.where(lane <= L_FREQ, lane - 1, lane - 1 - L_FREQ)
        mult = jnp.zeros((bb, PE_PAD), jnp.float32)
        for l in range(L_FREQ):
            mult = jnp.where(kexp == l, float(2 ** l), mult)
        phase = (x * math.pi) * mult                              # (BB,16)
        val = jnp.where(lane <= L_FREQ, jnp.sin(phase), jnp.cos(phase))
        val = jnp.where(lane == 0, x, val)                        # lane 0 = x
        pe = jnp.where(lane <= 2 * L_FREQ, val, 0.0)              # lanes 9..15 = 0

        feat = None
        for m in meta:
            r = m["row_start"]
            h = w_ref[m["bias_row"]:m["bias_row"] + 1, :]          # (1,32) bias row
            if m["feat_rows"]:
                h = h + jnp.dot(feat, w_ref[r:r + m["feat_rows"], :],
                                preferred_element_type=jnp.float32,
                                precision=lax.Precision.HIGHEST)
                r += m["feat_rows"]
            if m["pe_rows"]:
                h = h + jnp.dot(pe, w_ref[r:r + m["pe_rows"], :],
                                preferred_element_type=jnp.float32,
                                precision=lax.Precision.HIGHEST)
            feat = jnp.tanh(h) if m["last"] else jnp.maximum(h, 0.0)

        out_ref[...] = feat.astype(out_ref.dtype)                  # (BB, 32)

    return kernel


# ------------------------------- wrapper --------------------------------------
def _choose_tile(B):
    """Pick the per-grid-step batch tile.

    Large tiles amortize the ~0.35 us per-grid-step overhead; capping at
    ceil(B/2) keeps >= 2 grid steps so the 'parallel' axis can shard across
    both TensorCores on v7x.  VMEM at BB=1024 is well under 1 MiB."""
    B = max(int(B), 1)
    if B <= 8:
        BB = _round_up(B, 8)
    else:
        BB = max(8, min(MAX_TILE, _round_up((B + 1) // 2, 8)))
    B_pad = _round_up(B, BB)
    return BB, B_pad


def make_transnet_forward(params):
    """Pack weights + build/jit the kernel ONCE; returns forward(index)."""
    slab_np, meta = pack_params(params)
    slab = jax.device_put(jnp.asarray(slab_np))
    kernel = make_transnet_kernel(meta)
    slab_shape = slab_np.shape

    @jax.jit
    def _fwd(idx_flat, slab_arg):
        B = idx_flat.shape[0]
        idx = idx_flat.reshape(B, 1).astype(jnp.float32)
        BB, B_pad = _choose_tile(B)
        if B_pad != B:
            idx = jnp.pad(idx, ((0, B_pad - B), (0, 0)))
        out = pl.pallas_call(
            kernel,
            out_shape=jax.ShapeDtypeStruct((B_pad, N_PAD), jnp.float32),
            grid=(B_pad // BB,),
            in_specs=[
                # frame indices, per batch block (lane-sparse but only KiB total)
                pl.BlockSpec((BB, 1), lambda i: (i, 0)),
                # weight slab: single DMA, VMEM-resident across all grid steps
                pl.BlockSpec(slab_shape, lambda i: (0, 0)),
            ],
            out_specs=pl.BlockSpec((BB, N_PAD), lambda i: (i, 0)),
            compiler_params=pltpu.CompilerParams(
                dimension_semantics=("parallel",)),
        )(idx, slab_arg)
        return out[:B, :3]

    def forward(index):
        idx_flat = jnp.asarray(index, jnp.float32).reshape(-1)
        return _fwd(idx_flat, slab)

    return forward


# ------------------------------ pure-JAX reference ---------------------------
def transnet_ref(index, params):
    x = jnp.asarray(index).reshape(-1, 1).astype(jnp.float32)
    x = 2.0 * (x - MIN_INDEX) / (MAX_INDEX - MIN_INDEX) - 1.0
    freq = (2.0 ** jnp.arange(L_FREQ, dtype=jnp.float32)) * jnp.pi
    spec = x[..., None] * freq                               # (B,1,L)
    enc = jnp.stack([jnp.sin(spec), jnp.cos(spec)], axis=-2) # (B,1,2,L)
    enc = enc.reshape(x.shape[0], -1)                        # (B,2L) = [sin..., cos...]
    pe = jnp.concatenate([x, enc], axis=-1)                  # (B, 1+2L)
    feat = pe
    skip = set(CFG["tracking"]["skip"])
    for li, (w, b) in enumerate(params):
        if li in skip:
            feat = jnp.concatenate([feat, pe], axis=-1)
        feat = jnp.dot(feat, w, precision=lax.Precision.HIGHEST) + b
        feat = jnp.tanh(feat) if li == len(params) - 1 else jnp.maximum(feat, 0.0)
    return feat


# ---------------------------------- main --------------------------------------
if __name__ == "__main__":
    key = jax.random.PRNGKey(0)
    pkey, ikey, wkey = jax.random.split(key, 3)
    params = init_params(pkey)

    # deterministic example frame indices, batch = 8
    index = jax.random.randint(ikey, (8,), 0, CFG["n_img"]).astype(jnp.float32)

    # check 1: faithful init (last-layer weights ~1e-6)
    forward = make_transnet_forward(params)
    out = jax.block_until_ready(forward(index))
    ref = transnet_ref(index, params)
    assert out.shape == (8, 3)
    np.testing.assert_allclose(np.asarray(out), np.asarray(ref), atol=2e-3, rtol=2e-3)

    # check 2: non-trivial final-layer weights (the default ~1e-6 init would
    # mask slicing/tanh bugs under the tolerance above)
    kw, kb = jax.random.split(wkey)
    w3, b3 = params[-1]
    params_hot = params[:-1] + [
        (jax.random.normal(kw, w3.shape, jnp.float32) * 0.5,
         jax.random.normal(kb, b3.shape, jnp.float32) * 0.1)]
    forward_hot = make_transnet_forward(params_hot)
    out2 = jax.block_until_ready(forward_hot(index))
    ref2 = transnet_ref(index, params_hot)
    np.testing.assert_allclose(np.asarray(out2), np.asarray(ref2), atol=2e-3, rtol=2e-3)

    print("KERNEL_OK")
</pallas_src>

<mosaic_0001>
module attributes {stable_mosaic.version = 11 : i64} {
  func.func @kernel(%arg0: i32, %arg1: memref<8x1xf32, #tpu.memory_space<vmem>>, %arg2: memref<160x32xf32, #tpu.memory_space<vmem>>, %arg3: memref<8x32xf32, #tpu.memory_space<vmem>>) attributes {dimension_semantics = [#tpu.dimension_semantics<parallel>], iteration_bounds = array<i64: 1>, scalar_prefetch = 0 : i64, scratch_operands = 0 : i64, tpu.core_type = #tpu.core_type<tc>, window_params = [{transform_indices = @transform_0, window_bounds = array<i64: 8, 1>}, {pipeline_mode = #tpu.pipeline_mode<synchronous>, transform_indices = @transform_1, window_bounds = array<i64: 160, 32>}, {transform_indices = @transform_2, window_bounds = array<i64: 8, 32>}]} {
    %c0 = arith.constant 0 : index
    %c0_0 = arith.constant 0 : index
    %0 = vector.load %arg1[%c0, %c0_0] : memref<8x1xf32, #tpu.memory_space<vmem>>, vector<8x1xf32>
    %cst = arith.constant 0.000000e+00 : f32
    %1 = vector.broadcast %cst : f32 to vector<8x1xf32>
    %2 = arith.subf %0, %1 : vector<8x1xf32>
    %cst_1 = arith.constant 2.000000e+00 : f32
    %3 = vector.broadcast %cst_1 : f32 to vector<8x1xf32>
    %4 = arith.mulf %3, %2 : vector<8x1xf32>
    %cst_2 = arith.constant 1.000000e+02 : f32
    %5 = vector.broadcast %cst_2 : f32 to vector<8x1xf32>
    %6 = arith.divf %4, %5 : vector<8x1xf32>
    %cst_3 = arith.constant 1.000000e+00 : f32
    %7 = vector.broadcast %cst_3 : f32 to vector<8x1xf32>
    %8 = arith.subf %6, %7 : vector<8x1xf32>
    %9 = tpu.iota {dimensions = array<i32: 1>} : vector<8x16xi32>
    %c4_i32 = arith.constant 4 : i32
    %10 = vector.broadcast %c4_i32 : i32 to vector<8x16xi32>
    %11 = arith.cmpi sle, %9, %10 : vector<8x16xi32>
    %c1_i32 = arith.constant 1 : i32
    %12 = vector.broadcast %c1_i32 : i32 to vector<8x16xi32>
    %13 = arith.subi %9, %12 : vector<8x16xi32>
    %c1_i32_4 = arith.constant 1 : i32
    %14 = vector.broadcast %c1_i32_4 : i32 to vector<8x16xi32>
    %15 = arith.subi %9, %14 : vector<8x16xi32>
    %c4_i32_5 = arith.constant 4 : i32
    %16 = vector.broadcast %c4_i32_5 : i32 to vector<8x16xi32>
    %17 = arith.subi %15, %16 : vector<8x16xi32>
    %18 = arith.select %11, %13, %17 : vector<8x16xi1>, vector<8x16xi32>
    %cst_6 = arith.constant 0.000000e+00 : f32
    %19 = vector.broadcast %cst_6 : f32 to vector<8x16xf32>
    %c0_i32 = arith.constant 0 : i32
    %20 = vector.broadcast %c0_i32 : i32 to vector<8x16xi32>
    %21 = arith.cmpi eq, %18, %20 : vector<8x16xi32>
    %cst_7 = arith.constant 1.000000e+00 : f32
    %22 = vector.broadcast %cst_7 : f32 to vector<8x16xf32>
    %23 = arith.select %21, %22, %19 : vector<8x16xi1>, vector<8x16xf32>
    %c1_i32_8 = arith.constant 1 : i32
    %24 = vector.broadcast %c1_i32_8 : i32 to vector<8x16xi32>
    %25 = arith.cmpi eq, %18, %24 : vector<8x16xi32>
    %cst_9 = arith.constant 2.000000e+00 : f32
    %26 = vector.broadcast %cst_9 : f32 to vector<8x16xf32>
    %27 = arith.select %25, %26, %23 : vector<8x16xi1>, vector<8x16xf32>
    %c2_i32 = arith.constant 2 : i32
    %28 = vector.broadcast %c2_i32 : i32 to vector<8x16xi32>
    %29 = arith.cmpi eq, %18, %28 : vector<8x16xi32>
    %cst_10 = arith.constant 4.000000e+00 : f32
    %30 = vector.broadcast %cst_10 : f32 to vector<8x16xf32>
    %31 = arith.select %29, %30, %27 : vector<8x16xi1>, vector<8x16xf32>
    %c3_i32 = arith.constant 3 : i32
    %32 = vector.broadcast %c3_i32 : i32 to vector<8x16xi32>
    %33 = arith.cmpi eq, %18, %32 : vector<8x16xi32>
    %cst_11 = arith.constant 8.000000e+00 : f32
    %34 = vector.broadcast %cst_11 : f32 to vector<8x16xf32>
    %35 = arith.select %33, %34, %31 : vector<8x16xi1>, vector<8x16xf32>
    %cst_12 = arith.constant 3.14159274 : f32
    %36 = vector.broadcast %cst_12 : f32 to vector<8x1xf32>
    %37 = arith.mulf %8, %36 : vector<8x1xf32>
    %38 = vector.broadcast %37 : vector<8x1xf32> to vector<8x16xf32>
    %39 = arith.mulf %38, %35 : vector<8x16xf32>
    %c4_i32_13 = arith.constant 4 : i32
    %40 = vector.broadcast %c4_i32_13 : i32 to vector<8x16xi32>
    %41 = arith.cmpi sle, %9, %40 : vector<8x16xi32>
    %42 = math.sin %39 : vector<8x16xf32>
    %43 = math.cos %39 : vector<8x16xf32>
    %44 = arith.select %41, %42, %43 : vector<8x16xi1>, vector<8x16xf32>
    %c0_i32_14 = arith.constant 0 : i32
    %45 = vector.broadcast %c0_i32_14 : i32 to vector<8x16xi32>
    %46 = arith.cmpi eq, %9, %45 : vector<8x16xi32>
    %47 = vector.shape_cast %8 : vector<8x1xf32> to vector<8x1xf32>
    %48 = vector.broadcast %47 : vector<8x1xf32> to vector<8x16xf32>
    %49 = arith.select %46, %48, %44 : vector<8x16xi1>, vector<8x16xf32>
    %c8_i32 = arith.constant 8 : i32
    %50 = vector.broadcast %c8_i32 : i32 to vector<8x16xi32>
    %51 = arith.cmpi sle, %9, %50 : vector<8x16xi32>
    %cst_15 = arith.constant 0.000000e+00 : f32
    %52 = vector.broadcast %cst_15 : f32 to vector<8x16xf32>
    %53 = arith.select %51, %49, %52 : vector<8x16xi1>, vector<8x16xf32>
    %c16 = arith.constant 16 : index
    %c0_16 = arith.constant 0 : index
    %54 = vector.load %arg2[%c16, %c0_16] : memref<160x32xf32, #tpu.memory_space<vmem>>, vector<1x32xf32>
    %c0_17 = arith.constant 0 : index
    %c0_18 = arith.constant 0 : index
    %55 = vector.load %arg2[%c0_17, %c0_18] : memref<160x32xf32, #tpu.memory_space<vmem>>, vector<16x32xf32>
    %cst_19 = arith.constant dense<0.000000e+00> : vector<8x32xf32>
    %56 = tpu.matmul %53, %55, %cst_19 {dimension_numbers = #tpu.dot_dimension_numbers<[1], [0], [0], [1], [0, 0, 1, 1], [], []>, precision = #tpu.contract_precision<fp32>} : vector<8x16xf32>, vector<16x32xf32>, vector<8x32xf32> -> vector<8x32xf32>
    %57 = vector.broadcast %54 : vector<1x32xf32> to vector<8x32xf32>
    %58 = arith.addf %57, %56 : vector<8x32xf32>
    %cst_20 = arith.constant 0.000000e+00 : f32
    %59 = vector.broadcast %cst_20 : f32 to vector<8x32xf32>
    %60 = arith.maximumf %58, %59 : vector<8x32xf32>
    %c56 = arith.constant 56 : index
    %c0_21 = arith.constant 0 : index
    %61 = vector.load %arg2[%c56, %c0_21] : memref<160x32xf32, #tpu.memory_space<vmem>>, vector<1x32xf32>
    %c24 = arith.constant 24 : index
    %c0_22 = arith.constant 0 : index
    %62 = vector.load %arg2[%c24, %c0_22] : memref<160x32xf32, #tpu.memory_space<vmem>>, vector<32x32xf32>
    %cst_23 = arith.constant dense<0.000000e+00> : vector<8x32xf32>
    %63 = tpu.matmul %60, %62, %cst_23 {dimension_numbers = #tpu.dot_dimension_numbers<[1], [0], [0], [1], [0, 0, 1, 1], [], []>, precision = #tpu.contract_precision<fp32>} : vector<8x32xf32>, vector<32x32xf32>, vector<8x32xf32> -> vector<8x32xf32>
    %64 = vector.broadcast %61 : vector<1x32xf32> to vector<8x32xf32>
    %65 = arith.addf %64, %63 : vector<8x32xf32>
    %cst_24 = arith.constant 0.000000e+00 : f32
    %66 = vector.broadcast %cst_24 : f32 to vector<8x32xf32>
    %67 = arith.maximumf %65, %66 : vector<8x32xf32>
    %c112 = arith.constant 112 : index
    %c0_25 = arith.constant 0 : index
    %68 = vector.load %arg2[%c112, %c0_25] : memref<160x32xf32, #tpu.memory_space<vmem>>, vector<1x32xf32>
    %c64 = arith.constant 64 : index
    %c0_26 = arith.constant 0 : index
    %69 = vector.load %arg2[%c64, %c0_26] : memref<160x32xf32, #tpu.memory_space<vmem>>, vector<32x32xf32>
    %cst_27 = arith.constant dense<0.000000e+00> : vector<8x32xf32>
    %70 = tpu.matmul %67, %69, %cst_27 {dimension_numbers = #tpu.dot_dimension_numbers<[1], [0], [0], [1], [0, 0, 1, 1], [], []>, precision = #tpu.contract_precision<fp32>} : vector<8x32xf32>, vector<32x32xf32>, vector<8x32xf32> -> vector<8x32xf32>
    %71 = vector.broadcast %68 : vector<1x32xf32> to vector<8x32xf32>
    %72 = arith.addf %71, %70 : vector<8x32xf32>
    %c96 = arith.constant 96 : index
    %c0_28 = arith.constant 0 : index
    %73 = vector.load %arg2[%c96, %c0_28] : memref<160x32xf32, #tpu.memory_space<vmem>>, vector<16x32xf32>
    %cst_29 = arith.constant dense<0.000000e+00> : vector<8x32xf32>
    %74 = tpu.matmul %53, %73, %cst_29 {dimension_numbers = #tpu.dot_dimension_numbers<[1], [0], [0], [1], [0, 0, 1, 1], [], []>, precision = #tpu.contract_precision<fp32>} : vector<8x16xf32>, vector<16x32xf32>, vector<8x32xf32> -> vector<8x32xf32>
    %75 = arith.addf %72, %74 : vector<8x32xf32>
    %cst_30 = arith.constant 0.000000e+00 : f32
    %76 = vector.broadcast %cst_30 : f32 to vector<8x32xf32>
    %77 = arith.maximumf %75, %76 : vector<8x32xf32>
    %c152 = arith.constant 152 : index
    %c0_31 = arith.constant 0 : index
    %78 = vector.load %arg2[%c152, %c0_31] : memref<160x32xf32, #tpu.memory_space<vmem>>, vector<1x32xf32>
    %c120 = arith.constant 120 : index
    %c0_32 = arith.constant 0 : index
    %79 = vector.load %arg2[%c120, %c0_32] : memref<160x32xf32, #tpu.memory_space<vmem>>, vector<32x32xf32>
    %cst_33 = arith.constant dense<0.000000e+00> : vector<8x32xf32>
    %80 = tpu.matmul %77, %79, %cst_33 {dimension_numbers = #tpu.dot_dimension_numbers<[1], [0], [0], [1], [0, 0, 1, 1], [], []>, precision = #tpu.contract_precision<fp32>} : vector<8x32xf32>, vector<32x32xf32>, vector<8x32xf32> -> vector<8x32xf32>
    %81 = vector.broadcast %78 : vector<1x32xf32> to vector<8x32xf32>
    %82 = arith.addf %81, %80 : vector<8x32xf32>
    %83 = math.tanh %82 : vector<8x32xf32>
    %c0_34 = arith.constant 0 : index
    %c0_35 = arith.constant 0 : index
    %84 = vector.load %arg3[%c0_34, %c0_35] : memref<8x32xf32, #tpu.memory_space<vmem>>, vector<8x32xf32>
    tpu.vector_store %arg3[%c0_34, %c0_35], %83 {strides = array<i32>} : memref<8x32xf32, #tpu.memory_space<vmem>>, vector<8x32xf32>,
    return
  }
  func.func @transform_0(%arg0: i32) -> (i32, i32) {
    %c0_i32 = arith.constant 0 : i32
    %c0_i32_0 = arith.constant 0 : i32
    return %arg0, %c0_i32 : i32, i32
  }
  func.func @transform_1(%arg0: i32) -> (i32, i32) {
    %c0_i32 = arith.constant 0 : i32
    %c0_i32_0 = arith.constant 0 : i32
    %c0_i32_1 = arith.constant 0 : i32
    return %c0_i32, %c0_i32_0 : i32, i32
  }
  func.func @transform_2(%arg0: i32) -> (i32, i32) {
    %c0_i32 = arith.constant 0 : i32
    %c0_i32_0 = arith.constant 0 : i32
    return %arg0, %c0_i32 : i32, i32
  }
}

</mosaic_0001>

<bundles_post_ra>
// kernel: _fwd.1
= control target key start
LH: loop header
LB: loop body
LE: loop exit
PB: predicated region body
PF: predicated region fallthrough
CT: control target
= control target key end

     0   :  { %v1314_v0 = vmov 0   ;;  %v1315_v1 = vmov 100.0   ;;  %v22_v13 = vlaneseq  ;;  %v1316_v18 = vmov 0.0   ;;  %s1503_s0 = inlined_call_operand.vmem [shape: f32[8,1], index: 0, kind: input, shape index: {}]   ;;  %s1504_s1 = inlined_call_operand.vmem [shape: f32[160,32], index: 1, kind: input, shape index: {}]   ;;  %s1505_s2 = inlined_call_operand.vmem [shape: f32[8,32], index: 2, kind: output, shape index: {}]  }
   0x1   :  { %1305 = vset.pattern.permute.xlu0 %v1314_v0  ;;  %1310 = vrcp.f32 %v1315_v1  ;;  %v11_v4 = vld [vmem:[%s1503_s0] sm:$0xff]  ;;  %v1317_v36 = vmov 683565275   ;;  %v1318_v38 = vmov 2475754826  }
   0x2   :  { %v12_v7 = vmul.f32 2.0, %v11_v4  ;;  %v1342_v14 = vand.u32 127, %v22_v13  ;;  %v1319_v41 = vmov 2131351028   ;;  %v1320_v44 = vmov 2102212464  }
   0x3   :  { %v1321_v47 = vmov 920167782   ;;  %v1322_v50 = vmov 1326507024  }
   0x4   :  { %v1288_v15 = vadd.s32 4294967295, %v1342_v14  ;;  %vm24_vm1 = vcmp.le.s32.totalorder %v1342_v14, 4 }
   0x6   :  { %v1289_v16 = vadd.s32 4294967292, %v1288_v15 }
   0x7   :  { %v1311_v2 = vpop.eup %1310 }
   0x8   :  { %v14_v3 = vmul.f32 100.0, %v1311_v2  ;;  %vm18_vm0 = vweird.f32 %v1311_v2  ;;  %v27_v17 = vsel %vm24_vm1, %v1288_v15, %v1289_v16 }
   0x9   :  { %vm28_vm2 = vcmp.eq.s32.totalorder %v27_v17, 0  ;;  %vm30_vm3 = vcmp.eq.s32.totalorder %v27_v17, 1  ;;  %vm32_vm4 = vcmp.eq.s32.totalorder %v27_v17, 2  ;;  %vm34_vm5 = vcmp.eq.s32.totalorder %v27_v17, 3 }
   0xa   :  { %v15_v5 = vsub.f32 1.0, %v14_v3  ;;  %v29_v19 = vsel %vm28_vm2, 1.0, %v1316_v18 }
   0xb   :  { %v31_v20 = vsel %vm30_vm3, 2.0, %v29_v19 }
   0xc   :  { %v16_v6 = vmul.f32 %v1311_v2, %v15_v5  ;;  %v33_v21 = vsel %vm32_vm4, 4.0, %v31_v20 }
   0xd   :  { %v35_v22 = vsel %vm34_vm5, 8.0, %v33_v21 }
   0xe   :  { %v17_v8 = vadd.f32 %v1311_v2, %v16_v6 }
  0x10   :  { %v19_v9 = vsel %vm18_vm0, %v1311_v2, %v17_v8 }
  0x11   :  { %v20_v10 = vmul.f32 %v19_v9, %v12_v7 }
  0x13   :  { %v1287_v11 = vadd.f32 -1.0, %v20_v10 }
  0x15   :  { %v36_v12 = vmul.f32 3.1415927, %v1287_v11 }
  0x17   :  { %39 = vperm.xlu0 %1305, %v36_v12  }
  0x1f   :  { %356 = vperm.xlu0 %1305, %v1287_v11  }
  0x89   :  { %v40_v23 = vpop.permute.xlu0 %39 }
  0x8a   :  { %v1348_v24 = vmul.f32 %v40_v23, %v35_v22 }
  0x8c   :  { %v46_v25 = vand.u32 2139095040, %v1348_v24  ;;  %v43_v28 = vand.u32 2147483647, %v1348_v24  ;;  %vm45_vm3 = vcmp.lt.s32.totalorder %v1348_v24, 0 }
  0x8e   :  { %v47_v26 = vshrl.u32 %v46_v25, 23  ;;  %v50_v30 = vand.u32 8388607, %v43_v28  ;;  %vm44_vm4 = vcmp.le.f32.partialorder %v43_v28, 0.7853982 }
  0x90   :  { %v1290_v27 = vadd.s32 4294967169, %v47_v26  ;;  %v51_v34 = vor.u32 8388608, %v50_v30 }
  0x92   :  { %v53_v29 = vadd.s32 1, %v1290_v27  ;;  %v1365_v57 = vshll.u32 %v51_v34, 8 }
  0x94   :  { %vm54_vm6 = vcmp.gt.s32.totalorder %v53_v29, 0  ;;  %v92_v3 = vand.u32 65535, %v1365_v57  ;;  %v93_v4 = vshrl.u32 %v1365_v57, 16 }
  0x95   :  { %v55_v31 = vsel %vm54_vm6, %v53_v29, 0 }
  0x96   :  { %v57_v32 = vand.u32 31, %v55_v31  ;;  %v1356_v35 = vshrl.u32 %v55_v31, 5 }
  0x98   :  { %v1354_v33 = vsub.s32 32, %v57_v32  ;;  %v60_v37 = vshll.u32 %v1317_v36, %v57_v32  ;;  %v63_v39 = vshll.u32 %v1318_v38, %v57_v32  ;;  %v66_v43 = vshll.u32 %v1319_v41, %v57_v32 }
  0x99   :  { %v69_v46 = vshll.u32 %v1320_v44, %v57_v32  ;;  %v72_v49 = vshll.u32 %v1321_v47, %v57_v32  ;;  %vm75_vm7 = vcmp.lt.s32.totalorder %v1356_v35, 1  ;;  %vm78_vm8 = vcmp.lt.s32.totalorder %v1356_v35, 4 }
  0x9a   :  { %v61_v40 = vshrl.u32 %v1318_v38, %v1354_v33  ;;  %v64_v42 = vshrl.u32 %v1319_v41, %v1354_v33  ;;  %v67_v45 = vshrl.u32 %v1320_v44, %v1354_v33  ;;  %v70_v48 = vshrl.u32 %v1321_v47, %v1354_v33 }
  0x9b   :  { %v73_v51 = vshrl.u32 %v1322_v50, %v1354_v33  ;;  %vm77_vm9 = vcmp.lt.s32.totalorder %v1356_v35, 3  ;;  %vm76_vm10 = vcmp.lt.s32.totalorder %v1356_v35, 2  ;;  %v59_v32 = vshrl.u32 %v1317_v36, %v1354_v33  ;;  %v364_v35 = vld [vmem:[%s1504_s1 + $0x8] sm:$0xff] }
  0x9c   :  { %v62_v52 = vor.u32 %v61_v40, %v60_v37  ;;  %v65_v53 = vor.u32 %v64_v42, %v63_v39  ;;  %v68_v54 = vor.u32 %v67_v45, %v66_v43  ;;  %v71_v55 = vor.u32 %v70_v48, %v69_v46 }
  0x9d   :  { %v74_v56 = vor.u32 %v73_v51, %v72_v49 }
  0x9e   :  { %v83_v58 = vsel %vm75_vm7, %v62_v52, %v65_v53  ;;  %v87_v59 = vsel %vm75_vm7, %v65_v53, %v68_v54  ;;  %v84_v60 = vsel %vm78_vm8, %v71_v55, 920167782  ;;  %v80_v29 = vsel %vm78_vm8, %v68_v54, 2102212464 }
  0x9f   :  { %v88_v61 = vsel %vm78_vm8, %v74_v56, 1326507024  ;;  %v85_v62 = vsel %vm77_vm9, %v68_v54, %v84_v60  ;;  %v79_v41 = vsel %vm75_vm7, %v59_v32, %v62_v52  ;;  %v81_v42 = vsel %vm77_vm9, %v65_v53, %v80_v29 }
  0xa0   :  { %v89_v63 = vsel %vm77_vm9, %v71_v55, %v88_v61  ;;  %v86_v1 = vsel %vm76_vm10, %v83_v58, %v85_v62  ;;  %v82_v33 = vsel %vm76_vm10, %v79_v41, %v81_v42  ;;  %v383_v62 = vand.u32 4294901760, %v364_v35 }
  0xa1   :  { %v90_v2 = vsel %vm76_vm10, %v87_v59, %v89_v63  ;;  %v116_v7 = vand.u32 65535, %v86_v1  ;;  %v117_v8 = vshrl.u32 %v86_v1, 16  ;;  %v136_v49 = vmul.u32 %v1365_v57, %v82_v33 }
  0xa2   :  { %v94_v5 = vand.u32 65535, %v90_v2  ;;  %v95_v6 = vshrl.u32 %v90_v2, 16  ;;  %v363_v2 = vld [vmem:[%s1504_s1] sm:$0xff]  ;;  %468 = vmatpush.msra.mxu3 %v383_v62  ;;  %384 = vmatpush.msra.mxu0 %v383_v62 }
  0xa3   :  { %v119_v11 = vmul.u32 %v117_v8, %v92_v3  ;;  %v120_v12 = vmul.u32 %v116_v7, %v93_v4  ;;  %v118_v17 = vmul.u32 %v116_v7, %v92_v3  ;;  %v121_v21 = vmul.u32 %v117_v8, %v93_v4 }
  0xa4   :  { %v97_v9 = vmul.u32 %v95_v6, %v92_v3  ;;  %v98_v10 = vmul.u32 %v94_v5, %v93_v4  ;;  %v96_v13 = vmul.u32 %v94_v5, %v92_v3  ;;  %v99_v16 = vmul.u32 %v95_v6, %v93_v4 }
  0xa5   :  { %v122_v18 = vshll.u32 %v119_v11, 16  ;;  %v124_v23 = vshll.u32 %v120_v12, 16  ;;  %v123_v39 = vshrl.u32 %v119_v11, 16  ;;  %v125_v45 = vshrl.u32 %v120_v12, 16 }
  0xa6   :  { %v100_v15 = vshll.u32 %v97_v9, 16  ;;  %v102_v19 = vshll.u32 %v98_v10, 16  ;;  %v101_v34 = vshrl.u32 %v97_v9, 16  ;;  %v103_v43 = vshrl.u32 %v98_v10, 16 }
  0xa7   :  { %vm126_vm12 = vc.u32 %v118_v17, %v122_v18  ;;  %v128_v25 = vadd.s32 %v122_v18, %v118_v17  ;;  %v411_v3 = vsub.f32 %v364_v35, %v383_v62  ;;  %v385_v4 = vand.u32 4294901760, %v363_v2 }
  0xa8   :  { %vm104_vm11 = vc.u32 %v96_v13, %v100_v15  ;;  %v106_v20 = vadd.s32 %v100_v15, %v96_v13  ;;  %v127_v27 = vsel %vm126_vm12, 1, %v1314_v0  ;;  %vm353_vm12 = vcmp.eq.s32.totalorder %v1342_v14, 0 }
  0xa9   :  { %v105_v22 = vsel %vm104_vm11, 1, %v1314_v0  ;;  %v129_v31 = vadd.s32 %v127_v27, %v121_v21  ;;  %vm130_vm14 = vc.u32 %v128_v25, %v124_v23  ;;  %v132_v48 = vadd.s32 %v128_v25, %v124_v23  ;;  %443 = vmatpush.msra.mxu2 %v411_v3  ;;  %470 = vmatpush.msra.mxu3 %v385_v4 }
  0xaa   :  { %v107_v26 = vadd.s32 %v105_v22, %v99_v16  ;;  %vm108_vm13 = vc.u32 %v106_v20, %v102_v19  ;;  %v131_v38 = vsel %vm130_vm14, 1, %v1314_v0  ;;  %v412_v8 = vand.u32 4294901760, %v411_v3  ;;  %386 = vmatpush.msra.mxu0 %v385_v4 }
  0xab   :  { %v109_v30 = vsel %vm108_vm13, 1, %v1314_v0  ;;  %v133_v40 = vadd.s32 %v131_v38, %v129_v31  ;;  %v417_v9 = vsub.f32 %v363_v2, %v385_v4  ;;  %vm186_vm11 = vweird.f32 %v1348_v24  ;;  %v534_v2 = vld [vmem:[%s1504_s1 + $0x28] sm:$0xff] }
  0xac   :  { %v111_v37 = vadd.s32 %v109_v30, %v107_v26  ;;  %v413_v12 = vsub.f32 %v411_v3, %v412_v8  ;;  %495 = vmatpush.msrb.mxu0 %v412_v8  ;;  %vm360_vm13 = vcmp.le.s32.totalorder %v1342_v14, 8  ;;  %vm365_vm14 = vcmask 130048  }
  0xad   :  { %v134_v46 = vadd.s32 %v133_v40, %v123_v39  ;;  %446 = vmatpush.msra.mxu2 %v417_v9  ;;  %v418_v15 = vand.u32 4294901760, %v417_v9 }
  0xae   :  { %v112_v44 = vadd.s32 %v111_v37, %v101_v34  ;;  %v414_v16 = vand.u32 4294901760, %v413_v12 }
  0xaf   :  { %v135_v36 = vadd.s32 %v134_v46, %v125_v45  ;;  %v419_v19 = vsub.f32 %v417_v9, %v418_v15  ;;  %499 = vmatpush.msrb.mxu0 %v418_v15  ;;  %v532_v9 = vld [vmem:[%s1504_s1 + $0x18] sm:$0xff] }
  0xb0   :  { %v113_v47 = vadd.s32 %v112_v44, %v103_v43  ;;  %415 = vmatpush.msra.mxu1 %v414_v16 }
  0xb1   :  { %v139_v0 = vadd.s32 1, %v135_v36  ;;  %v420_v21 = vand.u32 4294901760, %v419_v19 }
  0xb2   :  { %vm138_vm15 = vc.u32 %v113_v47, %v132_v48  ;;  %v137_v63 = vadd.s32 %v132_v48, %v113_v47 }
  0xb3   :  { %v140_v50 = vsel %vm138_vm15, %v139_v0, %v135_v36  ;;  %421 = vmatpush.msra.mxu1 %v420_v21 }
  0xb4   :  { %v141_v51 = vadd.s32 %v140_v50, %v136_v49 }
  0xb5   :  { %520 = vmatpush.msrb.mxu1 %v383_v62 }
  0xb6   :  { %v142_v52 = vadd.s32 536870912, %v141_v51 }
  0xb7   :  { %522 = vmatpush.msrb.mxu1 %v385_v4  ;;  %v554_v4 = vand.u32 4294901760, %v534_v2 }
  0xb8   :  { %v143_v54 = vshrl.u32 %v142_v52, 30 }
  0xba   :  { %v144_v55 = vshll.u32 %v143_v54, 30  ;;  %v167_v25 = vsub.s32 4, %v143_v54 }
  0xbc   :  { %v145_v53 = vsub.s32 %v141_v51, %v144_v55  ;;  %v168_v31 = vsel %vm45_vm3, %v167_v25, %v143_v54 }
  0xbd   :  { %v170_v37 = vsel %vm44_vm4, 0, %v168_v31 }
  0xbe   :  { %vm146_vm0 = vcmp.lt.s32.totalorder %v145_v53, 0  ;;  %v147_v56 = vsub.s32 0, %v145_v53  ;;  %v187_v42 = vadd.s32 3, %v170_v37  ;;  %v342_v46 = vand.u32 3, %v170_v37 }
  0xc0   :  { %v148_v58 = vsel %vm146_vm0, %v147_v56, %v145_v53  ;;  %v188_v47 = vand.u32 3, %v187_v42  ;;  %vm343_vm5 = vcmp.lt.s32.totalorder %v342_v46, 2  ;;  %vm344_vm6 = vcmp.eq.s32.totalorder %v342_v46, 0 }
  0xc1   :  { %v149_v59 = vclz %v148_v58  ;;  %vm347_vm10 = vcmp.eq.s32.totalorder %v342_v46, 2  ;;  %v357_v58 = vpop.permute.xlu0 %356 }
  0xc2   :  { %vm189_vm7 = vcmp.lt.s32.totalorder %v188_v47, 2  ;;  %vm190_vm8 = vcmp.eq.s32.totalorder %v188_v47, 0  ;;  %vm193_vm9 = vcmp.eq.s32.totalorder %v188_v47, 2 }
  0xc3   :  { %v1291_v60 = vadd.s32 4294967294, %v149_v59 }
  0xc5   :  { %vm1292_vm2 = vcmp.lt.s32.totalorder %v1291_v60, 0 }
  0xc6   :  { %v152_v61 = vsel %vm1292_vm2, 0, %v1291_v60 }
  0xc7   :  { %v153_v57 = vsub.s32 32, %v152_v61  ;;  %v157_v1 = vsub.s32 4294967266, %v152_v61  ;;  %v154_v5 = vshll.u32 %v145_v53, %v152_v61 }
  0xc9   :  { %v155_v6 = vshrl.u32 %v137_v63, %v153_v57  ;;  %v158_v7 = vadd.s32 127, %v157_v1  ;;  %v535_v57 = vld [vmem:[%s1504_s1 + $0x30] sm:$0xff] }
  0xca   :  { %v552_v1 = vand.u32 4294901760, %v535_v57 }
  0xcb   :  { %v156_v10 = vor.u32 %v155_v6, %v154_v5  ;;  %v159_v11 = vshll.u32 %v158_v7, 23  ;;  %v533_v5 = vld [vmem:[%s1504_s1 + $0x20] sm:$0xff]  ;;  %v588_v7 = vsub.f32 %v534_v2, %v554_v4 }
  0xcc   :  { %v582_v3 = vsub.f32 %v535_v57, %v552_v1  ;;  %553 = vmatpush.msrb.mxu2 %v552_v1  ;;  %v556_v8 = vand.u32 4294901760, %v533_v5 }
  0xcd   :  { %v160_v13 = vor.u32 4788187, %v159_v11  ;;  %v163_v18 = vcvt.s32.f32 %v156_v10  ;;  %v589_v11 = vand.u32 4294901760, %v588_v7 }
  0xce   :  { %v583_v6 = vand.u32 4294901760, %v582_v3  ;;  %555 = vmatpush.msrb.mxu2 %v554_v4  ;;  %v594_v12 = vsub.f32 %v533_v5, %v556_v8 }
  0xcf   :  { %v161_v17 = vand.u32 2147483647, %v160_v13  ;;  %v558_v13 = vand.u32 4294901760, %v532_v9  ;;  %v590_v16 = vsub.f32 %v588_v7, %v589_v11 }
  0xd0   :  { %v584_v10 = vsub.f32 %v582_v3, %v583_v6  ;;  %557 = vmatpush.msrb.mxu2 %v556_v8 }
  0xd1   :  { %v164_v20 = vmul.f32 %v163_v18, %v161_v17  ;;  %v595_v17 = vand.u32 4294901760, %v594_v12  ;;  %v600_v18 = vsub.f32 %v532_v9, %v558_v13  ;;  %v591_v19 = vand.u32 4294901760, %v590_v16 }
  0xd2   :  { %v585_v15 = vand.u32 4294901760, %v584_v10  ;;  %559 = vmatpush.msrb.mxu2 %v558_v13  ;;  %v923_v10 = vld [vmem:[%s1504_s1 + $0x60] sm:$0xff] }
  0xd3   :  { %v165_v22 = vxor.u32 2147483648, %v164_v20  ;;  %v601_v21 = vand.u32 4294901760, %v600_v18 }
  0xd4   :  { %586 = vmatpush.msrb.mxu3 %v585_v15 }
  0xd5   :  { %v166_v23 = vsel %vm45_vm3, %v165_v22, %v164_v20  ;;  %v596_v20 = vsub.f32 %v594_v12, %v595_v17 }
  0xd6   :  { %v169_v26 = vsel %vm44_vm4, %v1348_v24, %v166_v23  ;;  %592 = vmatpush.msrb.mxu3 %v591_v19  ;;  %v602_v23 = vsub.f32 %v600_v18, %v601_v21 }
  0xd7   :  { %v171_v27 = vmul.f32 %v169_v26, %v169_v26  ;;  %v597_v22 = vand.u32 4294901760, %v596_v20 }
  0xd8   :  { %v603_v25 = vand.u32 4294901760, %v602_v23 }
  0xd9   :  { %v172_v29 = vmul.f32 -0.001358992, %v171_v27  ;;  %v179_v30 = vmul.f32 -0.00019511016, %v171_v27  ;;  %598 = vmatpush.msrb.mxu3 %v597_v22 }
  0xdb   :  { %v173_v32 = vadd.f32 0.041655596, %v172_v29  ;;  %v180_v34 = vadd.f32 0.008332121, %v179_v30  ;;  %604 = vmatpush.msrb.mxu3 %v603_v25 }
  0xdd   :  { %v174_v38 = vmul.f32 %v173_v32, %v171_v27  ;;  %v181_v39 = vmul.f32 %v180_v34, %v171_v27 }
  0xdf   :  { %v175_v40 = vadd.f32 -0.4999988, %v174_v38  ;;  %v182_v41 = vadd.f32 -0.16666654, %v181_v39  ;;  %v1306_v39 = vld [vmem:[%s1504_s1 + $0x10] ss:$0 sm:$0xff] }
  0xe1   :  { %v176_v43 = vmul.f32 %v175_v40, %v171_v27  ;;  %v183_v44 = vmul.f32 %v182_v41, %v171_v27 }
  0xe3   :  { %v177_v28 = vadd.f32 1.0, %v176_v43  ;;  %v184_v45 = vadd.f32 1.0, %v183_v44 }
  0xe5   :  { %v185_v48 = vmul.f32 %v184_v45, %v169_v26  ;;  %v194_v33 = vxor.u32 2147483648, %v177_v28 }
  0xe7   :  { %v191_v36 = vxor.u32 2147483648, %v185_v48  ;;  %v195_v49 = vsel %vm193_vm9, %v194_v33, %v185_v48  ;;  %v349_v51 = vsel %vm347_vm10, %v194_v33, %v185_v48  ;;  %v732_v33 = vld [vmem:[%s1504_s1 + $0x58] sm:$0xff] }
  0xe9   :  { %v192_v0 = vsel %vm190_vm8, %v177_v28, %v191_v36  ;;  %v346_v50 = vsel %vm344_vm6, %v177_v28, %v191_v36  ;;  %v748_v36 = vand.u32 4294901760, %v732_v33 }
  0xea   :  { %v196_v52 = vsel %vm189_vm7, %v192_v0, %v195_v49  ;;  %v350_v54 = vsel %vm343_vm5, %v346_v50, %v349_v51  ;;  %v731_v0 = vld [vmem:[%s1504_s1 + $0x50] sm:$0xff]  ;;  %v730_v51 = vld [vmem:[%s1504_s1 + $0x48] sm:$0xff] }
  0xeb   :  { %v197_v55 = vsel %vm186_vm11, nan, %v196_v52  ;;  %v351_v53 = vsel %vm186_vm11, nan, %v350_v54  ;;  %v778_v49 = vsub.f32 %v732_v33, %v748_v36  ;;  %v750_v50 = vand.u32 4294901760, %v731_v0 }
  0xec   :  { %v352_v56 = vsel %vm24_vm1, %v197_v55, %v351_v53  ;;  %vm536_vm1 = vcmask 261120   ;;  %v752_v55 = vand.u32 4294901760, %v730_v51  ;;  %v729_v53 = vld [vmem:[%s1504_s1 + $0x40] sm:$0xff] }
  0xed   :  { %v359_v59 = vsel %vm353_vm12, %v357_v58, %v352_v56  ;;  %v779_v52 = vand.u32 4294901760, %v778_v49  ;;  %v784_v54 = vsub.f32 %v731_v0, %v750_v50 }
  0xee   :  { %v361_v60 = vsel %vm360_vm13, %v359_v59, 0.0  ;;  %v790_v59 = vsub.f32 %v730_v51, %v752_v55 }
  0xef   :  { %v367_v35 = vsel %vm365_vm14, %v361_v60, 0  ;;  %v780_v56 = vsub.f32 %v778_v49, %v779_v52  ;;  %v785_v58 = vand.u32 4294901760, %v784_v54  ;;  %v754_v60 = vand.u32 4294901760, %v729_v53 }
  0xf0   :  { %v1418_v61 = vand.u32 4294901760, %v367_v35  ;;  %v791_v57 = vand.u32 4294901760, %v790_v59 }
  0xf2   :  { %v1421_v24 = vsub.f32 %v367_v35, %v1418_v61  ;;  %423 = vmatmul.f32.vlgmr.msra.gmra.mxu1 %v1418_v61  ;;  %v781_v35 = vand.u32 4294901760, %v780_v56 }
  0xf3   :  { %653 = vmatpush.msra.mxu1 %v552_v1 }
  0xf4   :  { %449 = vmatmul.f32.vlgmr.msra.gmra.mxu2 %v1421_v24  ;;  %v1426_v62 = vand.u32 4294901760, %v1421_v24 }
  0xf5   :  { %655 = vmatpush.msra.mxu1 %v554_v4  ;;  %682 = vmatpush.msra.mxu2 %v583_v6 }
  0xf6   :  { %474 = vmatmul.f32.vlgmr.msra.gmra.mxu3 %v1426_v62  ;;  %v390_v14 = vsub.f32 %v1421_v24, %v1426_v62 }
  0xf7   :  { %657 = vmatpush.msra.mxu1 %v556_v8  ;;  %686 = vmatpush.msra.mxu2 %v589_v11 }
  0xf8   :  { %v1431_v63 = vand.u32 4294901760, %v390_v14  ;;  %713 = vmatpush.msra.mxu3 %v552_v1  ;;  %v786_v14 = vsub.f32 %v784_v54, %v785_v58  ;;  %v796_v1 = vsub.f32 %v729_v53, %v754_v60 }
  0xf9   :  { %659 = vmatpush.msra.mxu1 %v558_v13  ;;  %690 = vmatpush.msra.mxu2 %v595_v17 }
  0xfa   :  { %392 = vmatmul.f32.vlgmr.msra.gmra.mxu0 %v1431_v63  ;;  %524 = vmatmul.f32.vlgmr.msrb.gmra.mxu1 %v1418_v61  ;;  %v787_v2 = vand.u32 4294901760, %v786_v14 }
  0xfb   :  { %624 = vmatpush.msra.mxu0 %v582_v3  ;;  %694 = vmatpush.msra.mxu2 %v601_v21  ;;  %v792_v3 = vsub.f32 %v790_v59, %v791_v57 }
  0xfc   :  { %715 = vmatpush.msra.mxu3 %v554_v4  ;;  %782 = vmatpush.msrb.mxu1 %v781_v35  ;;  %v797_v4 = vand.u32 4294901760, %v796_v1 }
  0xfd   :  { %627 = vmatpush.msra.mxu0 %v588_v7  ;;  %v793_v5 = vand.u32 4294901760, %v792_v3 }
  0xfe   :  { %717 = vmatpush.msra.mxu3 %v556_v8  ;;  %788 = vmatpush.msrb.mxu1 %v787_v2  ;;  %v798_v6 = vsub.f32 %v796_v1, %v797_v4  ;;  %v924_v8 = vld [vmem:[%s1504_s1 + $0x68] sm:$0xff] }
  0xff   :  { %630 = vmatpush.msra.mxu0 %v594_v12  ;;  %v939_v9 = vand.u32 4294901760, %v924_v8  ;;  %v941_v12 = vand.u32 4294901760, %v923_v10 }
 0x100   :  { %719 = vmatpush.msra.mxu3 %v558_v13  ;;  %794 = vmatpush.msrb.mxu1 %v793_v5  ;;  %v799_v7 = vand.u32 4294901760, %v798_v6 }
 0x101   :  { %633 = vmatpush.msra.mxu0 %v600_v18  ;;  %v967_v11 = vsub.f32 %v924_v8, %v939_v9  ;;  %v973_v15 = vsub.f32 %v923_v10, %v941_v12 }
 0x102   :  { %501 = vmatmul.f32.vlgmr.msrb.gmra.mxu0 %v1418_v61  ;;  %800 = vmatpush.msrb.mxu1 %v799_v7 }
 0x103   :  { %749 = vmatpush.msrb.mxu0 %v748_v36  ;;  %v968_v13 = vand.u32 4294901760, %v967_v11  ;;  %v974_v17 = vand.u32 4294901760, %v973_v15 }
 0x105   :  { %751 = vmatpush.msrb.mxu0 %v750_v50  ;;  %v969_v16 = vsub.f32 %v967_v11, %v968_v13  ;;  %v975_v19 = vsub.f32 %v973_v15, %v974_v17 }
 0x107   :  { %753 = vmatpush.msrb.mxu0 %v752_v55  ;;  %v970_v18 = vand.u32 4294901760, %v969_v16  ;;  %v976_v20 = vand.u32 4294901760, %v975_v19  ;;  %v1308_v19 = vld [vmem:[%s1504_s1 + $0x70] ss:$0 sm:$0xff] }
 0x109   :  { %755 = vmatpush.msrb.mxu0 %v754_v60 }
 0x16f   :  { %v424_v26 = vpop.f32.mrf.mxu1 }
 0x177   :  { %v393_v27 = vpop.f32.mrf.mxu0  ;;  %v450_v30 = vpop.f32.mrf.mxu2 }
 0x178   :  { %v425_v29 = vadd.f32 %v424_v26, %v393_v27  ;;  %v525_v40 = vpop.f32.mrf.mxu1 }
 0x179   :  { %v475_v32 = vpop.f32.mrf.mxu3 }
 0x17a   :  { %v451_v31 = vadd.f32 %v450_v30, %v425_v29 }
 0x17c   :  { %v476_v34 = vadd.f32 %v475_v32, %v451_v31  ;;  %v1307_v32 = vld [vmem:[%s1504_s1 + $0x38] ss:$0 sm:$0xff] }
 0x17f   :  { %v502_v37 = vpop.f32.mrf.mxu0 }
 0x180   :  { %v503_v38 = vadd.f32 %v502_v37, %v476_v34 }
 0x182   :  { %v526_v41 = vadd.f32 %v525_v40, %v503_v38 }
 0x184   :  { %v529_v42 = vadd.f32 %v1306_v39, %v526_v41 }
 0x186   :  { %v530_v43 = vmax.f32 %v529_v42, 0.0 }
 0x188   :  { %v538_v44 = vsel %vm536_vm1, %v530_v43, 0 }
 0x189   :  { %v560_v28 = vand.u32 4294901760, %v538_v44 }
 0x18b   :  { %606 = vmatmul.f32.vlgmr.msrb.gmra.mxu3 %v560_v28  ;;  %v561_v45 = vsub.f32 %v538_v44, %v560_v28 }
 0x18c   :  { %849 = vmatpush.msrb.mxu3 %v748_v36 }
 0x18d   :  { %636 = vmatmul.f32.vlgmr.msra.gmra.mxu0 %v561_v45  ;;  %v562_v46 = vand.u32 4294901760, %v561_v45 }
 0x18e   :  { %851 = vmatpush.msrb.mxu3 %v750_v50  ;;  %878 = vmatpush.msra.mxu0 %v779_v52 }
 0x18f   :  { %663 = vmatmul.f32.vlgmr.msra.gmra.mxu1 %v562_v46  ;;  %v563_v47 = vsub.f32 %v561_v45, %v562_v46  ;;  %v1090_v45 = vld [vmem:[%s1504_s1 + $0x90] sm:$0xff] }
 0x190   :  { %853 = vmatpush.msrb.mxu3 %v752_v55  ;;  %882 = vmatpush.msra.mxu0 %v785_v58  ;;  %v1106_v46 = vand.u32 4294901760, %v1090_v45 }
 0x191   :  { %v564_v48 = vand.u32 4294901760, %v563_v47  ;;  %909 = vmatpush.msra.mxu1 %v748_v36  ;;  %v1087_v36 = vld [vmem:[%s1504_s1 + $0x78] sm:$0xff] }
 0x192   :  { %855 = vmatpush.msrb.mxu3 %v754_v60  ;;  %886 = vmatpush.msra.mxu0 %v791_v57  ;;  %v1136_v47 = vsub.f32 %v1090_v45, %v1106_v46  ;;  %v1112_v51 = vand.u32 4294901760, %v1087_v36 }
 0x193   :  { %565 = vmatmul.f32.vlgmr.msrb.gmra.mxu2 %v564_v48  ;;  %721 = vmatmul.f32.vlgmr.msra.gmra.mxu3 %v560_v28 }
 0x194   :  { %820 = vmatpush.msrb.mxu2 %v778_v49  ;;  %890 = vmatpush.msra.mxu0 %v797_v4  ;;  %v1154_v53 = vsub.f32 %v1087_v36, %v1112_v51 }
 0x195   :  { %911 = vmatpush.msra.mxu1 %v750_v50  ;;  %971 = vmatpush.msra.mxu3 %v970_v18 }
 0x196   :  { %823 = vmatpush.msrb.mxu2 %v784_v54 }
 0x197   :  { %913 = vmatpush.msra.mxu1 %v752_v55  ;;  %977 = vmatpush.msra.mxu3 %v976_v20 }
 0x198   :  { %826 = vmatpush.msrb.mxu2 %v790_v59  ;;  %v1155_v59 = vand.u32 4294901760, %v1154_v53 }
 0x199   :  { %915 = vmatpush.msra.mxu1 %v754_v60 }
 0x19a   :  { %829 = vmatpush.msrb.mxu2 %v796_v1  ;;  %v1156_v35 = vsub.f32 %v1154_v53, %v1155_v59 }
 0x19b   :  { %696 = vmatmul.f32.vlgmr.msra.gmra.mxu2 %v560_v28 }
 0x19c   :  { %940 = vmatpush.msra.mxu2 %v939_v9  ;;  %v1157_v57 = vand.u32 4294901760, %v1156_v35 }
 0x19e   :  { %942 = vmatpush.msra.mxu2 %v941_v12 }
 0x20a   :  { %v637_v25 = vpop.f32.mrf.mxu0 }
 0x20c   :  { %v664_v27 = vpop.f32.mrf.mxu1 }
 0x20e   :  { %v607_v21 = vpop.f32.mrf.mxu3 }
 0x216   :  { %v566_v22 = vpop.f32.mrf.mxu2  ;;  %v722_v34 = vpop.f32.mrf.mxu3 }
 0x217   :  { %v608_v23 = vadd.f32 %v607_v21, %v566_v22 }
 0x219   :  { %v638_v26 = vadd.f32 %v637_v25, %v608_v23 }
 0x21b   :  { %v665_v29 = vadd.f32 %v664_v27, %v638_v26 }
 0x21e   :  { %v697_v30 = vpop.f32.mrf.mxu2 }
 0x21f   :  { %v698_v31 = vadd.f32 %v697_v30, %v665_v29 }
 0x221   :  { %v723_v37 = vadd.f32 %v722_v34, %v698_v31 }
 0x223   :  { %v726_v38 = vadd.f32 %v1307_v32, %v723_v37 }
 0x225   :  { %v727_v39 = vmax.f32 %v726_v38, 0.0 }
 0x227   :  { %v734_v40 = vsel %vm536_vm1, %v727_v39, 0 }
 0x228   :  { %v756_v41 = vand.u32 4294901760, %v734_v40 }
 0x22a   :  { %802 = vmatmul.f32.vlgmr.msrb.gmra.mxu1 %v756_v41  ;;  %v757_v42 = vsub.f32 %v734_v40, %v756_v41 }
 0x22b   :  { %1024 = vmatpush.msrb.mxu1 %v939_v9 }
 0x22c   :  { %832 = vmatmul.f32.vlgmr.msrb.gmra.mxu2 %v757_v42  ;;  %v758_v43 = vand.u32 4294901760, %v757_v42 }
 0x22d   :  { %1051 = vmatpush.msrb.mxu2 %v968_v13  ;;  %1026 = vmatpush.msrb.mxu1 %v941_v12 }
 0x22e   :  { %859 = vmatmul.f32.vlgmr.msrb.gmra.mxu3 %v758_v43  ;;  %v759_v44 = vsub.f32 %v757_v42, %v758_v43 }
 0x22f   :  { %1076 = vmatpush.msrb.mxu3 %v939_v9  ;;  %1055 = vmatpush.msrb.mxu2 %v974_v17 }
 0x230   :  { %v760_v28 = vand.u32 4294901760, %v759_v44 }
 0x231   :  { %1078 = vmatpush.msrb.mxu3 %v941_v12 }
 0x232   :  { %761 = vmatmul.f32.vlgmr.msrb.gmra.mxu0 %v760_v28  ;;  %917 = vmatmul.f32.vlgmr.msra.gmra.mxu1 %v756_v41 }
 0x233   :  { %999 = vmatpush.msrb.mxu0 %v967_v11 }
 0x234   :  { %948 = vmatmul.f32.vlgmr.msra.gmra.mxu2 %v1431_v63  ;;  %v1089_v63 = vld [vmem:[%s1504_s1 + $0x88] sm:$0xff] }
 0x235   :  { %1002 = vmatpush.msrb.mxu0 %v973_v15  ;;  %v1108_v48 = vand.u32 4294901760, %v1089_v63  ;;  %1178 = vmatpush.msra.mxu2 %v1136_v47 }
 0x236   :  { %979 = vmatmul.f32.vlgmr.msra.gmra.mxu3 %v1418_v61 }
 0x237   :  { %1207 = vmatpush.msra.mxu3 %v1106_v46  ;;  %v1142_v33 = vsub.f32 %v1089_v63, %v1108_v48 }
 0x239   :  { %1209 = vmatpush.msra.mxu3 %v1108_v48  ;;  %v1143_v49 = vand.u32 4294901760, %v1142_v33  ;;  %1181 = vmatpush.msra.mxu2 %v1142_v33 }
 0x23a   :  { %892 = vmatmul.f32.vlgmr.msra.gmra.mxu0 %v756_v41  ;;  %1030 = vmatmul.f32.vlgmr.msrb.gmra.mxu1 %v1426_v62  ;;  %v1088_v62 = vld [vmem:[%s1504_s1 + $0x80] sm:$0xff] }
 0x23b   :  { %1107 = vmatpush.msra.mxu0 %v1106_v46  ;;  %v1144_v54 = vsub.f32 %v1142_v33, %v1143_v49 }
 0x23c   :  { %1057 = vmatmul.f32.vlgmr.msrb.gmra.mxu2 %v1418_v61 }
 0x23d   :  { %1109 = vmatpush.msra.mxu0 %v1108_v48  ;;  %v1145_v56 = vand.u32 4294901760, %v1144_v54 }
 0x23e   :  { %1080 = vmatmul.f32.vlgmr.msrb.gmra.mxu3 %v1418_v61  ;;  %v1137_v61 = vand.u32 4294901760, %v1136_v47 }
 0x240   :  { %v1138_v0 = vsub.f32 %v1136_v47, %v1137_v61 }
 0x242   :  { %1005 = vmatmul.f32.vlgmr.msrb.gmra.mxu0 %v1421_v24  ;;  %v1110_v24 = vand.u32 4294901760, %v1088_v62  ;;  %v1139_v52 = vand.u32 4294901760, %v1138_v0 }
 0x244   :  { %v1148_v50 = vsub.f32 %v1088_v62, %v1110_v24  ;;  %1211 = vmatpush.msra.mxu3 %v1110_v24  ;;  %1111 = vmatpush.msra.mxu0 %v1110_v24 }
 0x245   :  { %1140 = vmatpush.msra.mxu1 %v1139_v52 }
 0x246   :  { %v1149_v55 = vand.u32 4294901760, %v1148_v50  ;;  %1184 = vmatpush.msra.mxu2 %v1148_v50  ;;  %1213 = vmatpush.msra.mxu3 %v1112_v51 }
 0x247   :  { %1113 = vmatpush.msra.mxu0 %v1112_v51  ;;  %1146 = vmatpush.msra.mxu1 %v1145_v56 }
 0x248   :  { %v1150_v58 = vsub.f32 %v1148_v50, %v1149_v55  ;;  %1187 = vmatpush.msra.mxu2 %v1154_v53 }
 0x249   :  { %1236 = vmatpush.msrb.mxu0 %v1137_v61 }
 0x24a   :  { %v1151_v60 = vand.u32 4294901760, %v1150_v58 }
 0x24b   :  { %1240 = vmatpush.msrb.mxu0 %v1143_v49 }
 0x24c   :  { %1152 = vmatpush.msra.mxu1 %v1151_v60 }
 0x24d   :  { %1244 = vmatpush.msrb.mxu0 %v1149_v55 }
 0x24e   :  { %1158 = vmatpush.msra.mxu1 %v1157_v57 }
 0x24f   :  { %1248 = vmatpush.msrb.mxu0 %v1155_v59 }
 0x250   :  { %1267 = vmatpush.msrb.mxu1 %v1106_v46  ;;  %v1309_v46 = vld [vmem:[%s1504_s1 + $0x98] ss:$0 sm:$0xff] }
 0x252   :  { %1269 = vmatpush.msrb.mxu1 %v1108_v48 }
 0x254   :  { %1271 = vmatpush.msrb.mxu1 %v1110_v24 }
 0x256   :  { %1273 = vmatpush.msrb.mxu1 %v1112_v51 }
 0x2a7   :  { %v803_v14 = vpop.f32.mrf.mxu1 }
 0x2af   :  { %v762_v1 = vpop.f32.mrf.mxu0  ;;  %v833_v2 = vpop.f32.mrf.mxu2 }
 0x2b0   :  { %v804_v4 = vadd.f32 %v803_v14, %v762_v1  ;;  %v918_v5 = vpop.f32.mrf.mxu1 }
 0x2b1   :  { %v860_v3 = vpop.f32.mrf.mxu3 }
 0x2b2   :  { %v834_v7 = vadd.f32 %v833_v2, %v804_v4 }
 0x2b4   :  { %v861_v10 = vadd.f32 %v860_v3, %v834_v7 }
 0x2b7   :  { %v893_v6 = vpop.f32.mrf.mxu0  ;;  %v949_v8 = vpop.f32.mrf.mxu2 }
 0x2b8   :  { %v894_v11 = vadd.f32 %v893_v6, %v861_v10  ;;  %v1031_v16 = vpop.f32.mrf.mxu1 }
 0x2b9   :  { %v980_v9 = vpop.f32.mrf.mxu3 }
 0x2ba   :  { %v981_v12 = vadd.f32 %v980_v9, %v949_v8  ;;  %v919_v17 = vadd.f32 %v918_v5, %v894_v11 }
 0x2bc   :  { %v922_v23 = vadd.f32 %v1308_v19, %v919_v17 }
 0x2bf   :  { %v1006_v13 = vpop.f32.mrf.mxu0  ;;  %v1058_v20 = vpop.f32.mrf.mxu2 }
 0x2c0   :  { %v1007_v15 = vadd.f32 %v1006_v13, %v981_v12 }
 0x2c1   :  { %v1081_v22 = vpop.f32.mrf.mxu3 }
 0x2c2   :  { %v1032_v18 = vadd.f32 %v1031_v16, %v1007_v15 }
 0x2c4   :  { %v1059_v21 = vadd.f32 %v1058_v20, %v1032_v18 }
 0x2c6   :  { %v1082_v25 = vadd.f32 %v1081_v22, %v1059_v21 }
 0x2c8   :  { %v1084_v26 = vadd.f32 %v1082_v25, %v922_v23 }
 0x2ca   :  { %v1085_v27 = vmax.f32 %v1084_v26, 0.0 }
 0x2cc   :  { %v1092_v29 = vsel %vm536_vm1, %v1085_v27, 0 }
 0x2cd   :  { %v1114_v30 = vand.u32 4294901760, %v1092_v29 }
 0x2cf   :  { %v1115_v31 = vsub.f32 %v1092_v29, %v1114_v30  ;;  %1160 = vmatmul.f32.vlgmr.msra.gmra.mxu1 %v1114_v30 }
 0x2d1   :  { %1190 = vmatmul.f32.vlgmr.msra.gmra.mxu2 %v1115_v31  ;;  %v1116_v32 = vand.u32 4294901760, %v1115_v31 }
 0x2d3   :  { %1217 = vmatmul.f32.vlgmr.msra.gmra.mxu3 %v1116_v32  ;;  %v1117_v34 = vsub.f32 %v1115_v31, %v1116_v32 }
 0x2d5   :  { %v1118_v37 = vand.u32 4294901760, %v1117_v34 }
 0x2d7   :  { %1119 = vmatmul.f32.vlgmr.msra.gmra.mxu0 %v1118_v37  ;;  %1275 = vmatmul.f32.vlgmr.msrb.gmra.mxu1 %v1114_v30 }
 0x2df   :  { %1250 = vmatmul.f32.vlgmr.msrb.gmra.mxu0 %v1114_v30 }
 0x34c   :  { %v1161_v38 = vpop.f32.mrf.mxu1 }
 0x354   :  { %v1120_v39 = vpop.f32.mrf.mxu0  ;;  %v1191_v41 = vpop.f32.mrf.mxu2 }
 0x355   :  { %v1162_v40 = vadd.f32 %v1161_v38, %v1120_v39  ;;  %v1276_v63 = vpop.f32.mrf.mxu1 }
 0x356   :  { %v1218_v43 = vpop.f32.mrf.mxu3 }
 0x357   :  { %v1192_v42 = vadd.f32 %v1191_v41, %v1162_v40 }
 0x359   :  { %v1219_v44 = vadd.f32 %v1218_v43, %v1192_v42 }
 0x35c   :  { %v1251_v28 = vpop.f32.mrf.mxu0 }
 0x35d   :  { %v1252_v45 = vadd.f32 %v1251_v28, %v1219_v44 }
 0x35f   :  { %v1277_v47 = vadd.f32 %v1276_v63, %v1252_v45 }
 0x361   :  { %v1280_v48 = vadd.f32 %v1309_v46, %v1277_v47 }
 0x363   :  { %1312 = vtanh.f32 %v1280_v48 }
 0x369   :  { %v1313_v62 = vpop.eup %1312 }
 0x36a   :  { %1282 = vst.msk [vmem:[%s1505_s2] sm:$0xff] %vm536_vm1, %v1313_v62 }

</bundles_post_ra>
